<compile_context>
chip_gen: v5e
topology: v5e:2x2
jax: 0.10.0
libtpu: 0.0.40
codegen_flags: <defaults>
</compile_context>

<pallas_src>
import jax
import jax.numpy as jnp
import numpy as np
from jax.experimental import pallas as pl
from jax.experimental.pallas import tpu as pltpu


def _round_up(x, m):
    return ((x + m - 1) // m) * m


def _auto_tile(n, s, vmem_budget_bytes=12 * 1024 * 1024):
    """Largest 128-multiple lane tile whose double-buffered blocks fit budget."""
    # Per lane per grid step: inputs (2S + 7 f32) + outputs (9S f32), x2 buffers.
    per_lane_bytes = (11 * s + 7) * 4 * 2
    t = max(vmem_budget_bytes // per_lane_bytes, 128)
    t = (t // 128) * 128
    t = min(t, 2048)                       # per-step overhead is tiny past this
    return min(t, _round_up(n, 128))


def get_inputs_kernel(t01_ref, rays_o_ref, rays_d_ref, radii_ref,
                      means_ref, covs_ref, pos_ref):
    """One grid step processes a [S, TILE_N] slab (samples x rays-on-lanes)."""
    t0 = t01_ref[0]                              # [S, TILE_N]
    t1 = t01_ref[1]                              # [S, TILE_N]
    c = (t0 + t1) * 0.5                          # torch.mean(t_inters, dim=-1)
    d = (t1 - t0) * 0.5
    c2 = c * c
    d2 = d * d
    d4 = d2 * d2

    denom = 3.0 * c2 + d2
    # Single reciprocal reused for every former divide.
    # TODO(synk): approx=True would push this onto the EUP (free bundle slot)
    # if downstream tolerates ~1e-3 relative error; kept exact for the test.
    inv_denom = pl.reciprocal(denom, approx=False)
    inv_denom2 = inv_denom * inv_denom

    t_mean = c + (2.0 * c * d2) * inv_denom
    t_var = d2 * (1.0 / 3.0) - (4.0 / 15.0) * (d4 * (12.0 * c2 - d2)) * inv_denom2
    r_var = (4.0 / 15.0) * d4 * inv_denom
    r = radii_ref[...]                           # [1, TILE_N], broadcasts over S
    r_var = (r * r) * (0.25 * c2 + (5.0 / 12.0) * d2 - r_var)   # [S, TILE_N]

    # Per-ray direction norm, [1, TILE_N].
    dx = rays_d_ref[0:1, :]
    dy = rays_d_ref[1:2, :]
    dz = rays_d_ref[2:3, :]
    inv_dn2 = pl.reciprocal(dx * dx + dy * dy + dz * dz, approx=False)

    for k in range(3):                           # static unroll over xyz planes
        dk = rays_d_ref[k:k + 1, :]              # [1, TILE_N]
        ok = rays_o_ref[k:k + 1, :]              # [1, TILE_N]
        dk2 = dk * dk
        null_k = 1.0 - dk2 * inv_dn2             # [1, TILE_N]
        means_ref[k] = ok + t_mean * dk          # [S, TILE_N] lane-dense stores
        covs_ref[k] = t_var * dk2 + r_var * null_k
        pos_ref[k] = ok + c * dk


def get_inputs(rays_o, rays_d, radii, t_inters, inters, *, tile_n=None):
    """rays_o, rays_d: [N, 3]; radii: [N, 1]; t_inters: [N, inters, 2].

    Returns (means, covs, pos, dir), each [N, inters, 3], matching the
    PyTorch `Get_Inputs.forward`.
    """
    N = rays_o.shape[0]
    S = int(inters)
    assert t_inters.shape == (N, S, 2)

    f32 = jnp.float32
    rays_o = rays_o.astype(f32)
    rays_d = rays_d.astype(f32)
    radii = radii.astype(f32)
    t_inters = t_inters.astype(f32)

    # Lane-dense tiling: rays on the last (lane) axis, padded to 128 multiples.
    if tile_n is None:
        tile = _auto_tile(N, S)
    else:
        tile = min(_round_up(int(tile_n), 128), _round_up(N, 128))
    n_pad = _round_up(N, tile)
    grid = (n_pad // tile,)
    pad_n = n_pad - N

    def pad_last(x, value):
        if pad_n == 0:
            return x
        cfg = [(0, 0)] * (x.ndim - 1) + [(0, pad_n)]
        return jnp.pad(x, cfg, constant_values=value)

    # Glue: single [2, S, N] interval array (one contiguous reshuffle instead
    # of two strided slices), plus transposed per-ray quantities. Pad values
    # are chosen so padded lanes stay finite (no NaN/Inf ever created).
    t01 = pad_last(jnp.transpose(t_inters, (2, 1, 0)), 1.0)   # [2, S, Npad]
    ro_t = pad_last(rays_o.T, 0.0)                            # [3, Npad]
    rd_t = pad_last(rays_d.T, 1.0)                            # [3, Npad]
    rad_t = pad_last(radii.T, 0.0)                            # [1, Npad]

    out3 = jax.ShapeDtypeStruct((3, S, n_pad), f32)
    means_t, covs_t, pos_t = pl.pallas_call(
        get_inputs_kernel,
        grid=grid,
        in_specs=[
            pl.BlockSpec((2, S, tile), lambda i: (0, 0, i)),   # t0/t1
            pl.BlockSpec((3, tile), lambda i: (0, i)),         # rays_o^T
            pl.BlockSpec((3, tile), lambda i: (0, i)),         # rays_d^T
            pl.BlockSpec((1, tile), lambda i: (0, i)),         # radii^T
        ],
        out_specs=[pl.BlockSpec((3, S, tile), lambda i: (0, 0, i))] * 3,
        out_shape=[out3, out3, out3],
        compiler_params=pltpu.CompilerParams(
            dimension_semantics=("parallel",)),
    )(t01, ro_t, rd_t, rad_t)

    # Glue back to the PyTorch [N, S, 3] convention.
    # TODO(synk): downstream consumers should ideally take the kernel-native
    # [3, S, N] layout directly; this transpose re-streams the outputs once.
    def to_nsc(a):
        return jnp.transpose(a[:, :, :N], (2, 1, 0))

    means = to_nsc(means_t)
    covs = to_nsc(covs_t)
    pos = to_nsc(pos_t)
    # `dir` is pure replication of rays_d — keep it out of the kernel.
    dir_xyz = jnp.broadcast_to(rays_d[:, None, :], (N, S, 3))
    return means, covs, pos, dir_xyz


def get_inputs_ref(rays_o, rays_d, radii, t_inters, inters):
    """Pure-JAX reference mirroring the PyTorch forward."""
    c = jnp.mean(t_inters, axis=-1)
    d = (t_inters[..., 1] - t_inters[..., 0]) / 2.0
    t_mean = c + (2.0 * c * d ** 2) / (3.0 * c ** 2 + d ** 2)
    t_var0 = d ** 2 / 3.0
    t_var1 = (d ** 4 * (12.0 * c ** 2 - d ** 2)) / (3.0 * c ** 2 + d ** 2) ** 2
    t_var = t_var0 - (4.0 / 15.0) * t_var1
    r_var = (4.0 / 15.0) * d ** 4 / (3.0 * c ** 2 + d ** 2)
    r_var = radii ** 2 * (0.25 * c ** 2 + (5.0 / 12.0) * d ** 2 - r_var)
    dir_xyz = jnp.tile(rays_d[:, None, :], (1, inters, 1))
    means = rays_o[:, None, :] + t_mean[..., None] * dir_xyz
    null = 1.0 - dir_xyz ** 2 / jnp.sum(dir_xyz ** 2, axis=-1, keepdims=True)
    covs = t_var[..., None] * dir_xyz ** 2 + r_var[..., None] * null
    pos = rays_o[:, None, :] + c[..., None] * dir_xyz
    return means, covs, pos, dir_xyz


if __name__ == "__main__":
    key = jax.random.PRNGKey(0)

    def make_inputs(k, N, S):
        k0, k1, k2, k3, k4 = jax.random.split(k, 5)
        rays_o = jax.random.normal(k0, (N, 3), dtype=jnp.float32)
        rays_d = jax.random.normal(k1, (N, 3), dtype=jnp.float32) + 0.1
        radii = 0.01 + 0.05 * jax.random.uniform(k2, (N, 1), dtype=jnp.float32)
        # Strictly increasing positive interval endpoints: t1 > t0 > 0.
        t_near = 0.5 + jax.random.uniform(k3, (N, S), dtype=jnp.float32)
        t_delta = 0.1 + jax.random.uniform(k4, (N, S), dtype=jnp.float32)
        t_inters = jnp.stack([t_near, t_near + t_delta], axis=-1)   # [N, S, 2]
        return rays_o, rays_d, radii, t_inters

    # (N, S, tile_n): auto-tiled single-step case, forced small-tile multi-step
    # case, and a non-128-multiple N with padding + multi-step grid.
    cases = [(8, 8, None), (384, 16, 128), (1000, 24, 256)]
    for idx, (N, S, tile_n) in enumerate(cases):
        args = make_inputs(jax.random.fold_in(key, idx), N, S)
        outs = get_inputs(*args, S, tile_n=tile_n)
        outs = jax.block_until_ready(outs)
        refs = get_inputs_ref(*args, S)
        for o, r in zip(outs, refs):
            np.testing.assert_allclose(np.asarray(o), np.asarray(r),
                                       rtol=1e-5, atol=1e-5)

    print("KERNEL_OK")
</pallas_src>

<mosaic_0001>
module attributes {stable_mosaic.version = 11 : i64} {
  func.func @get_inputs_kernel(%arg0: i32, %arg1: memref<2x8x128xf32, #tpu.memory_space<vmem>>, %arg2: memref<3x128xf32, #tpu.memory_space<vmem>>, %arg3: memref<3x128xf32, #tpu.memory_space<vmem>>, %arg4: memref<1x128xf32, #tpu.memory_space<vmem>>, %arg5: memref<3x8x128xf32, #tpu.memory_space<vmem>>, %arg6: memref<3x8x128xf32, #tpu.memory_space<vmem>>, %arg7: memref<3x8x128xf32, #tpu.memory_space<vmem>>) attributes {dimension_semantics = [#tpu.dimension_semantics<parallel>], iteration_bounds = array<i64: 1>, scalar_prefetch = 0 : i64, scratch_operands = 0 : i64, tpu.core_type = #tpu.core_type<tc>, window_params = [{transform_indices = @transform_0, window_bounds = array<i64: 2, 8, 128>}, {transform_indices = @transform_1, window_bounds = array<i64: 3, 128>}, {transform_indices = @transform_2, window_bounds = array<i64: 3, 128>}, {transform_indices = @transform_3, window_bounds = array<i64: 1, 128>}, {transform_indices = @transform_4, window_bounds = array<i64: 3, 8, 128>}, {transform_indices = @transform_5, window_bounds = array<i64: 3, 8, 128>}, {transform_indices = @transform_6, window_bounds = array<i64: 3, 8, 128>}]} {
    %c0 = arith.constant 0 : index
    %c0_0 = arith.constant 0 : index
    %c0_1 = arith.constant 0 : index
    %0 = vector.load %arg1[%c0, %c0_0, %c0_1] : memref<2x8x128xf32, #tpu.memory_space<vmem>>, vector<1x8x128xf32>
    %1 = vector.shape_cast %0 : vector<1x8x128xf32> to vector<8x128xf32>
    %c1 = arith.constant 1 : index
    %c0_2 = arith.constant 0 : index
    %c0_3 = arith.constant 0 : index
    %2 = vector.load %arg1[%c1, %c0_2, %c0_3] : memref<2x8x128xf32, #tpu.memory_space<vmem>>, vector<1x8x128xf32>
    %3 = vector.shape_cast %2 : vector<1x8x128xf32> to vector<8x128xf32>
    %4 = arith.addf %1, %3 : vector<8x128xf32>
    %cst = arith.constant 5.000000e-01 : f32
    %5 = vector.broadcast %cst : f32 to vector<8x128xf32>
    %6 = arith.mulf %4, %5 : vector<8x128xf32>
    %7 = arith.subf %3, %1 : vector<8x128xf32>
    %cst_4 = arith.constant 5.000000e-01 : f32
    %8 = vector.broadcast %cst_4 : f32 to vector<8x128xf32>
    %9 = arith.mulf %7, %8 : vector<8x128xf32>
    %10 = arith.mulf %6, %6 : vector<8x128xf32>
    %11 = arith.mulf %9, %9 : vector<8x128xf32>
    %12 = arith.mulf %11, %11 : vector<8x128xf32>
    %cst_5 = arith.constant 3.000000e+00 : f32
    %13 = vector.broadcast %cst_5 : f32 to vector<8x128xf32>
    %14 = arith.mulf %13, %10 : vector<8x128xf32>
    %15 = arith.addf %14, %11 : vector<8x128xf32>
    %16 = tpu.reciprocal %15 : vector<8x128xf32> -> vector<8x128xf32>
    %17 = arith.mulf %16, %16 : vector<8x128xf32>
    %cst_6 = arith.constant 2.000000e+00 : f32
    %18 = vector.broadcast %cst_6 : f32 to vector<8x128xf32>
    %19 = arith.mulf %18, %6 : vector<8x128xf32>
    %20 = arith.mulf %19, %11 : vector<8x128xf32>
    %21 = arith.mulf %20, %16 : vector<8x128xf32>
    %22 = arith.addf %6, %21 : vector<8x128xf32>
    %cst_7 = arith.constant 0.333333343 : f32
    %23 = vector.broadcast %cst_7 : f32 to vector<8x128xf32>
    %24 = arith.mulf %11, %23 : vector<8x128xf32>
    %cst_8 = arith.constant 1.200000e+01 : f32
    %25 = vector.broadcast %cst_8 : f32 to vector<8x128xf32>
    %26 = arith.mulf %25, %10 : vector<8x128xf32>
    %27 = arith.subf %26, %11 : vector<8x128xf32>
    %28 = arith.mulf %12, %27 : vector<8x128xf32>
    %cst_9 = arith.constant 0.266666681 : f32
    %29 = vector.broadcast %cst_9 : f32 to vector<8x128xf32>
    %30 = arith.mulf %29, %28 : vector<8x128xf32>
    %31 = arith.mulf %30, %17 : vector<8x128xf32>
    %32 = arith.subf %24, %31 : vector<8x128xf32>
    %cst_10 = arith.constant 0.266666681 : f32
    %33 = vector.broadcast %cst_10 : f32 to vector<8x128xf32>
    %34 = arith.mulf %33, %12 : vector<8x128xf32>
    %35 = arith.mulf %34, %16 : vector<8x128xf32>
    %c0_11 = arith.constant 0 : index
    %c0_12 = arith.constant 0 : index
    %36 = vector.load %arg4[%c0_11, %c0_12] : memref<1x128xf32, #tpu.memory_space<vmem>>, vector<1x128xf32>
    %37 = arith.mulf %36, %36 : vector<1x128xf32>
    %cst_13 = arith.constant 2.500000e-01 : f32
    %38 = vector.broadcast %cst_13 : f32 to vector<8x128xf32>
    %39 = arith.mulf %38, %10 : vector<8x128xf32>
    %cst_14 = arith.constant 0.416666657 : f32
    %40 = vector.broadcast %cst_14 : f32 to vector<8x128xf32>
    %41 = arith.mulf %40, %11 : vector<8x128xf32>
    %42 = arith.addf %39, %41 : vector<8x128xf32>
    %43 = arith.subf %42, %35 : vector<8x128xf32>
    %44 = vector.broadcast %37 : vector<1x128xf32> to vector<8x128xf32>
    %45 = arith.mulf %44, %43 : vector<8x128xf32>
    %c0_15 = arith.constant 0 : index
    %c0_16 = arith.constant 0 : index
    %46 = vector.load %arg3[%c0_15, %c0_16] : memref<3x128xf32, #tpu.memory_space<vmem>>, vector<1x128xf32>
    %c1_17 = arith.constant 1 : index
    %c0_18 = arith.constant 0 : index
    %47 = vector.load %arg3[%c1_17, %c0_18] : memref<3x128xf32, #tpu.memory_space<vmem>>, vector<1x128xf32>
    %c2 = arith.constant 2 : index
    %c0_19 = arith.constant 0 : index
    %48 = vector.load %arg3[%c2, %c0_19] : memref<3x128xf32, #tpu.memory_space<vmem>>, vector<1x128xf32>
    %49 = arith.mulf %46, %46 : vector<1x128xf32>
    %50 = arith.mulf %47, %47 : vector<1x128xf32>
    %51 = arith.addf %49, %50 : vector<1x128xf32>
    %52 = arith.mulf %48, %48 : vector<1x128xf32>
    %53 = arith.addf %51, %52 : vector<1x128xf32>
    %54 = tpu.reciprocal %53 : vector<1x128xf32> -> vector<1x128xf32>
    %c0_20 = arith.constant 0 : index
    %c0_21 = arith.constant 0 : index
    %55 = vector.load %arg3[%c0_20, %c0_21] : memref<3x128xf32, #tpu.memory_space<vmem>>, vector<1x128xf32>
    %c0_22 = arith.constant 0 : index
    %c0_23 = arith.constant 0 : index
    %56 = vector.load %arg2[%c0_22, %c0_23] : memref<3x128xf32, #tpu.memory_space<vmem>>, vector<1x128xf32>
    %57 = arith.mulf %55, %55 : vector<1x128xf32>
    %58 = arith.mulf %57, %54 : vector<1x128xf32>
    %cst_24 = arith.constant 1.000000e+00 : f32
    %59 = vector.broadcast %cst_24 : f32 to vector<1x128xf32>
    %60 = arith.subf %59, %58 : vector<1x128xf32>
    %61 = vector.broadcast %55 : vector<1x128xf32> to vector<8x128xf32>
    %62 = arith.mulf %22, %61 : vector<8x128xf32>
    %63 = vector.broadcast %56 : vector<1x128xf32> to vector<8x128xf32>
    %64 = arith.addf %63, %62 : vector<8x128xf32>
    %c0_25 = arith.constant 0 : index
    %c0_26 = arith.constant 0 : index
    %c0_27 = arith.constant 0 : index
    %65 = vector.load %arg5[%c0_25, %c0_26, %c0_27] : memref<3x8x128xf32, #tpu.memory_space<vmem>>, vector<1x8x128xf32>
    %66 = vector.shape_cast %65 : vector<1x8x128xf32> to vector<8x128xf32>
    %67 = vector.shape_cast %64 : vector<8x128xf32> to vector<1x8x128xf32>
    tpu.vector_store %arg5[%c0_25, %c0_26, %c0_27], %67 {strides = array<i32>} : memref<3x8x128xf32, #tpu.memory_space<vmem>>, vector<1x8x128xf32>,
    %68 = vector.broadcast %57 : vector<1x128xf32> to vector<8x128xf32>
    %69 = arith.mulf %32, %68 : vector<8x128xf32>
    %70 = vector.broadcast %60 : vector<1x128xf32> to vector<8x128xf32>
    %71 = arith.mulf %45, %70 : vector<8x128xf32>
    %72 = arith.addf %69, %71 : vector<8x128xf32>
    %c0_28 = arith.constant 0 : index
    %c0_29 = arith.constant 0 : index
    %c0_30 = arith.constant 0 : index
    %73 = vector.load %arg6[%c0_28, %c0_29, %c0_30] : memref<3x8x128xf32, #tpu.memory_space<vmem>>, vector<1x8x128xf32>
    %74 = vector.shape_cast %73 : vector<1x8x128xf32> to vector<8x128xf32>
    %75 = vector.shape_cast %72 : vector<8x128xf32> to vector<1x8x128xf32>
    tpu.vector_store %arg6[%c0_28, %c0_29, %c0_30], %75 {strides = array<i32>} : memref<3x8x128xf32, #tpu.memory_space<vmem>>, vector<1x8x128xf32>,
    %76 = vector.broadcast %55 : vector<1x128xf32> to vector<8x128xf32>
    %77 = arith.mulf %6, %76 : vector<8x128xf32>
    %78 = vector.broadcast %56 : vector<1x128xf32> to vector<8x128xf32>
    %79 = arith.addf %78, %77 : vector<8x128xf32>
    %c0_31 = arith.constant 0 : index
    %c0_32 = arith.constant 0 : index
    %c0_33 = arith.constant 0 : index
    %80 = vector.load %arg7[%c0_31, %c0_32, %c0_33] : memref<3x8x128xf32, #tpu.memory_space<vmem>>, vector<1x8x128xf32>
    %81 = vector.shape_cast %80 : vector<1x8x128xf32> to vector<8x128xf32>
    %82 = vector.shape_cast %79 : vector<8x128xf32> to vector<1x8x128xf32>
    tpu.vector_store %arg7[%c0_31, %c0_32, %c0_33], %82 {strides = array<i32>} : memref<3x8x128xf32, #tpu.memory_space<vmem>>, vector<1x8x128xf32>,
    %c1_34 = arith.constant 1 : index
    %c0_35 = arith.constant 0 : index
    %83 = vector.load %arg3[%c1_34, %c0_35] : memref<3x128xf32, #tpu.memory_space<vmem>>, vector<1x128xf32>
    %c1_36 = arith.constant 1 : index
    %c0_37 = arith.constant 0 : index
    %84 = vector.load %arg2[%c1_36, %c0_37] : memref<3x128xf32, #tpu.memory_space<vmem>>, vector<1x128xf32>
    %85 = arith.mulf %83, %83 : vector<1x128xf32>
    %86 = arith.mulf %85, %54 : vector<1x128xf32>
    %cst_38 = arith.constant 1.000000e+00 : f32
    %87 = vector.broadcast %cst_38 : f32 to vector<1x128xf32>
    %88 = arith.subf %87, %86 : vector<1x128xf32>
    %89 = vector.broadcast %83 : vector<1x128xf32> to vector<8x128xf32>
    %90 = arith.mulf %22, %89 : vector<8x128xf32>
    %91 = vector.broadcast %84 : vector<1x128xf32> to vector<8x128xf32>
    %92 = arith.addf %91, %90 : vector<8x128xf32>
    %c1_39 = arith.constant 1 : index
    %c0_40 = arith.constant 0 : index
    %c0_41 = arith.constant 0 : index
    %93 = vector.load %arg5[%c1_39, %c0_40, %c0_41] : memref<3x8x128xf32, #tpu.memory_space<vmem>>, vector<1x8x128xf32>
    %94 = vector.shape_cast %93 : vector<1x8x128xf32> to vector<8x128xf32>
    %95 = vector.shape_cast %92 : vector<8x128xf32> to vector<1x8x128xf32>
    tpu.vector_store %arg5[%c1_39, %c0_40, %c0_41], %95 {strides = array<i32>} : memref<3x8x128xf32, #tpu.memory_space<vmem>>, vector<1x8x128xf32>,
    %96 = vector.broadcast %85 : vector<1x128xf32> to vector<8x128xf32>
    %97 = arith.mulf %32, %96 : vector<8x128xf32>
    %98 = vector.broadcast %88 : vector<1x128xf32> to vector<8x128xf32>
    %99 = arith.mulf %45, %98 : vector<8x128xf32>
    %100 = arith.addf %97, %99 : vector<8x128xf32>
    %c1_42 = arith.constant 1 : index
    %c0_43 = arith.constant 0 : index
    %c0_44 = arith.constant 0 : index
    %101 = vector.load %arg6[%c1_42, %c0_43, %c0_44] : memref<3x8x128xf32, #tpu.memory_space<vmem>>, vector<1x8x128xf32>
    %102 = vector.shape_cast %101 : vector<1x8x128xf32> to vector<8x128xf32>
    %103 = vector.shape_cast %100 : vector<8x128xf32> to vector<1x8x128xf32>
    tpu.vector_store %arg6[%c1_42, %c0_43, %c0_44], %103 {strides = array<i32>} : memref<3x8x128xf32, #tpu.memory_space<vmem>>, vector<1x8x128xf32>,
    %104 = vector.broadcast %83 : vector<1x128xf32> to vector<8x128xf32>
    %105 = arith.mulf %6, %104 : vector<8x128xf32>
    %106 = vector.broadcast %84 : vector<1x128xf32> to vector<8x128xf32>
    %107 = arith.addf %106, %105 : vector<8x128xf32>
    %c1_45 = arith.constant 1 : index
    %c0_46 = arith.constant 0 : index
    %c0_47 = arith.constant 0 : index
    %108 = vector.load %arg7[%c1_45, %c0_46, %c0_47] : memref<3x8x128xf32, #tpu.memory_space<vmem>>, vector<1x8x128xf32>
    %109 = vector.shape_cast %108 : vector<1x8x128xf32> to vector<8x128xf32>
    %110 = vector.shape_cast %107 : vector<8x128xf32> to vector<1x8x128xf32>
    tpu.vector_store %arg7[%c1_45, %c0_46, %c0_47], %110 {strides = array<i32>} : memref<3x8x128xf32, #tpu.memory_space<vmem>>, vector<1x8x128xf32>,
    %c2_48 = arith.constant 2 : index
    %c0_49 = arith.constant 0 : index
    %111 = vector.load %arg3[%c2_48, %c0_49] : memref<3x128xf32, #tpu.memory_space<vmem>>, vector<1x128xf32>
    %c2_50 = arith.constant 2 : index
    %c0_51 = arith.constant 0 : index
    %112 = vector.load %arg2[%c2_50, %c0_51] : memref<3x128xf32, #tpu.memory_space<vmem>>, vector<1x128xf32>
    %113 = arith.mulf %111, %111 : vector<1x128xf32>
    %114 = arith.mulf %113, %54 : vector<1x128xf32>
    %cst_52 = arith.constant 1.000000e+00 : f32
    %115 = vector.broadcast %cst_52 : f32 to vector<1x128xf32>
    %116 = arith.subf %115, %114 : vector<1x128xf32>
    %117 = vector.broadcast %111 : vector<1x128xf32> to vector<8x128xf32>
    %118 = arith.mulf %22, %117 : vector<8x128xf32>
    %119 = vector.broadcast %112 : vector<1x128xf32> to vector<8x128xf32>
    %120 = arith.addf %119, %118 : vector<8x128xf32>
    %c2_53 = arith.constant 2 : index
    %c0_54 = arith.constant 0 : index
    %c0_55 = arith.constant 0 : index
    %121 = vector.load %arg5[%c2_53, %c0_54, %c0_55] : memref<3x8x128xf32, #tpu.memory_space<vmem>>, vector<1x8x128xf32>
    %122 = vector.shape_cast %121 : vector<1x8x128xf32> to vector<8x128xf32>
    %123 = vector.shape_cast %120 : vector<8x128xf32> to vector<1x8x128xf32>
    tpu.vector_store %arg5[%c2_53, %c0_54, %c0_55], %123 {strides = array<i32>} : memref<3x8x128xf32, #tpu.memory_space<vmem>>, vector<1x8x128xf32>,
    %124 = vector.broadcast %113 : vector<1x128xf32> to vector<8x128xf32>
    %125 = arith.mulf %32, %124 : vector<8x128xf32>
    %126 = vector.broadcast %116 : vector<1x128xf32> to vector<8x128xf32>
    %127 = arith.mulf %45, %126 : vector<8x128xf32>
    %128 = arith.addf %125, %127 : vector<8x128xf32>
    %c2_56 = arith.constant 2 : index
    %c0_57 = arith.constant 0 : index
    %c0_58 = arith.constant 0 : index
    %129 = vector.load %arg6[%c2_56, %c0_57, %c0_58] : memref<3x8x128xf32, #tpu.memory_space<vmem>>, vector<1x8x128xf32>
    %130 = vector.shape_cast %129 : vector<1x8x128xf32> to vector<8x128xf32>
    %131 = vector.shape_cast %128 : vector<8x128xf32> to vector<1x8x128xf32>
    tpu.vector_store %arg6[%c2_56, %c0_57, %c0_58], %131 {strides = array<i32>} : memref<3x8x128xf32, #tpu.memory_space<vmem>>, vector<1x8x128xf32>,
    %132 = vector.broadcast %111 : vector<1x128xf32> to vector<8x128xf32>
    %133 = arith.mulf %6, %132 : vector<8x128xf32>
    %134 = vector.broadcast %112 : vector<1x128xf32> to vector<8x128xf32>
    %135 = arith.addf %134, %133 : vector<8x128xf32>
    %c2_59 = arith.constant 2 : index
    %c0_60 = arith.constant 0 : index
    %c0_61 = arith.constant 0 : index
    %136 = vector.load %arg7[%c2_59, %c0_60, %c0_61] : memref<3x8x128xf32, #tpu.memory_space<vmem>>, vector<1x8x128xf32>
    %137 = vector.shape_cast %136 : vector<1x8x128xf32> to vector<8x128xf32>
    %138 = vector.shape_cast %135 : vector<8x128xf32> to vector<1x8x128xf32>
    tpu.vector_store %arg7[%c2_59, %c0_60, %c0_61], %138 {strides = array<i32>} : memref<3x8x128xf32, #tpu.memory_space<vmem>>, vector<1x8x128xf32>,
    return
  }
  func.func @transform_0(%arg0: i32) -> (i32, i32, i32) {
    %c0_i32 = arith.constant 0 : i32
    %c0_i32_0 = arith.constant 0 : i32
    %c0_i32_1 = arith.constant 0 : i32
    return %c0_i32, %c0_i32_0, %arg0 : i32, i32, i32
  }
  func.func @transform_1(%arg0: i32) -> (i32, i32) {
    %c0_i32 = arith.constant 0 : i32
    %c0_i32_0 = arith.constant 0 : i32
    return %c0_i32, %arg0 : i32, i32
  }
  func.func @transform_2(%arg0: i32) -> (i32, i32) {
    %c0_i32 = arith.constant 0 : i32
    %c0_i32_0 = arith.constant 0 : i32
    return %c0_i32, %arg0 : i32, i32
  }
  func.func @transform_3(%arg0: i32) -> (i32, i32) {
    %c0_i32 = arith.constant 0 : i32
    %c0_i32_0 = arith.constant 0 : i32
    return %c0_i32, %arg0 : i32, i32
  }
  func.func @transform_4(%arg0: i32) -> (i32, i32, i32) {
    %c0_i32 = arith.constant 0 : i32
    %c0_i32_0 = arith.constant 0 : i32
    %c0_i32_1 = arith.constant 0 : i32
    return %c0_i32, %c0_i32_0, %arg0 : i32, i32, i32
  }
  func.func @transform_5(%arg0: i32) -> (i32, i32, i32) {
    %c0_i32 = arith.constant 0 : i32
    %c0_i32_0 = arith.constant 0 : i32
    %c0_i32_1 = arith.constant 0 : i32
    return %c0_i32, %c0_i32_0, %arg0 : i32, i32, i32
  }
  func.func @transform_6(%arg0: i32) -> (i32, i32, i32) {
    %c0_i32 = arith.constant 0 : i32
    %c0_i32_0 = arith.constant 0 : i32
    %c0_i32_1 = arith.constant 0 : i32
    return %c0_i32, %c0_i32_0, %arg0 : i32, i32, i32
  }
}

</mosaic_0001>

<bundles_post_ra>
// kernel: tpu_custom_call.1
= control target key start
LH: loop header
LB: loop body
LE: loop exit
PB: predicated region body
PF: predicated region fallthrough
CT: control target
= control target key end

     0   :  { %12 = vsyncpa [#allocation3], 0  ;;  %s561_s0 = inlined_call_operand.hbm [shape: f32[2,8,128], index: 0, kind: input, shape index: {}]   ;;  %s562_s1 = inlined_call_operand.hbm [shape: f32[3,128], index: 1, kind: input, shape index: {}]   ;;  %s563_s2 = inlined_call_operand.hbm [shape: f32[3,128], index: 2, kind: input, shape index: {}]   ;;  %s564_s3 = inlined_call_operand.vmem [shape: f32[1,128], index: 3, kind: input, shape index: {}]   ;;  %s565_s4 = inlined_call_operand.hbm [shape: f32[3,8,128], index: 4, kind: output, shape index: {0}]   ;;  %s566_s5 = inlined_call_operand.hbm [shape: f32[3,8,128], index: 5, kind: output, shape index: {1}]   ;;  %s567_s6 = inlined_call_operand.hbm [shape: f32[3,8,128], index: 6, kind: output, shape index: {2}]  }
   0x1   :  { %13 = vsyncpa [#allocation6], 0 }
   0x2   :  { %14 = vsyncpa [#allocation4], 0  ;;  %s34_s23 = sshll.u32 %s562_s1, 4  ;;  %s35_s23 = int_to_ptr.hbm [resolvable:$true] %s34_s23 }
   0x3   :  { %15 = vsyncpa [#allocation10], 0  ;;  %s423_s24 = smov [#allocation5]   ;;  %s20_s28 = sshll.u32 %s561_s0, 4  ;;  %s21_s28 = int_to_ptr.hbm [resolvable:$true] %s20_s28 }
   0x4   :  { %s36_s25 = sshll.u32 %s423_s24, 4  ;;  %s424_s29 = smov [#allocation2]   ;;  %s37_s25 = int_to_ptr.vmem [resolvable:$true] %s36_s25 }
   0x5   :  { %39 = dma.hbm_to_vmem [thread:$0]  %s35_s23, 64, %s37_s25, [#allocation6]  }
   0x6   :  { %s22_s30 = sshll.u32 %s424_s29, 4  ;;  %s425_s7 = smov 128   ;;  %s23_s30 = int_to_ptr.vmem [resolvable:$true] %s22_s30 }
   0x7   :  { %s426_s8 = smov 8   ;;  %s45_s10 = sshll.u32 %s563_s2, 4  ;;  %s46_s10 = int_to_ptr.hbm [resolvable:$true] %s45_s10 }
   0x8   :  { %28 = dma.hbm_to_vmem [thread:$0]  %s21_s28, 256, %s23_s30, [#allocation3], %s425_s7, %s425_s7, %s426_s8  }
   0x9   :  { %s427_s11 = smov [#allocation7]  }
   0xa   :  { %s47_s12 = sshll.u32 %s427_s11, 4  ;;  %s48_s12 = int_to_ptr.vmem [resolvable:$true] %s47_s12 }
   0xb   :  { %50 = dma.hbm_to_vmem [thread:$0]  %s46_s10, 64, %s48_s12, [#allocation6]  }
   0xc   :  { %415 = dma.done.wait [#allocation3], 256  }
   0xd   :  { %416 = vsyncadd [#allocation3], 4294967040 }
   0xe   :  { %417 = dma.done.wait [#allocation6], 128  }
   0xf   :  { %418 = vsyncadd [#allocation6], 4294967168  ;;  %v65_v0 = vld [vmem:[#allocation2] sm:$0xff]  ;;  %v67_v1 = vld [vmem:[#allocation2 + $0x8] sm:$0xff]  ;;  %s217_s16 = sshll.u32 %s566_s5, 4  ;;  %s429_s17 = smov [#allocation11]   ;;  %s218_s16 = int_to_ptr.hbm [resolvable:$true] %s217_s16 }
  0x10   :  { %v68_v2 = vadd.f32 %v67_v1, %v65_v0  ;;  %v70_v3 = vsub.f32 %v67_v1, %v65_v0  ;;  %v115_v4 = vld [vmem:[#allocation7] sm:$0x1]  ;;  %v116_v5 = vld [vmem:[#allocation7 + $0x1] sm:$0x1]  ;;  %v117_v6 = vld [vmem:[#allocation7 + $0x2] sm:$0x1] }
  0x11   :  { %v478_v7 = vmul.f32 %v115_v4, %v115_v4  ;;  %v119_v8 = vmul.f32 %v116_v5, %v116_v5  ;;  %v121_v9 = vmul.f32 %v117_v6, %v117_v6  ;;  %v482_v12 = vld [vmem:[#allocation7] ss:$0 sm:$0xff]  ;;  %v485_v14 = vld [vmem:[#allocation7 + $0x1] ss:$0 sm:$0xff]  ;;  %v491_v18 = vld [vmem:[#allocation5] ss:$0 sm:$0xff] }
  0x12   :  { %v480_v10 = vmul.f32 0.5, %v68_v2  ;;  %v71_v11 = vmul.f32 0.5, %v70_v3  ;;  %v495_v21 = vld [vmem:[#allocation5 + $0x1] ss:$0 sm:$0xff]  ;;  %v500_v24 = vld [vmem:[#allocation7 + $0x2] ss:$0 sm:$0xff] }
  0x13   :  { %v120_v13 = vadd.f32 %v119_v8, %v478_v7  ;;  %v503_v26 = vld [vmem:[#allocation5 + $0x2] ss:$0 sm:$0xff]  ;;  %v105_v31 = vld [vmem:[%s564_s3] sm:$0x1]  ;;  %v154_v42 = vld [vmem:[#allocation7 + $0x1] sm:$0x1] }
  0x14   :  { %v72_v15 = vmul.f32 %v480_v10, %v480_v10  ;;  %v489_v16 = vmul.f32 %v71_v11, %v71_v11  ;;  %v151_v19 = vmul.f32 %v482_v12, %v480_v10  ;;  %v172_v22 = vmul.f32 %v485_v14, %v480_v10  ;;  %v176_v43 = vld [vmem:[#allocation7 + $0x2] sm:$0x1]  ;;  %s428_s3 = smov [#allocation9]   ;;  %s228_s18 = sshll.u32 %s429_s17, 4  ;;  %s229_s18 = int_to_ptr.vmem [resolvable:$true] %s228_s18 }
  0x15   :  { %v122_v17 = vadd.f32 %v121_v9, %v120_v13  ;;  %v194_v28 = vmul.f32 %v500_v24, %v480_v10  ;;  %v106_v41 = vmul.f32 %v105_v31, %v105_v31  ;;  %v92_v46 = vmul.f32 2.0, %v480_v10  ;;  %s215_s13 = sshll.u32 %s428_s3, 4  ;;  %s230_s21 = sshll.u32 %s567_s6, 4  ;;  %s216_s13 = int_to_ptr.vmem [resolvable:$true] %s215_s13  ;;  %s231_s21 = int_to_ptr.hbm [resolvable:$true] %s230_s21 }
  0x16   :  { %v75_v20 = vmul.f32 3.0, %v72_v15  ;;  %v152_v25 = vadd.f32 %v491_v18, %v151_v19  ;;  %v173_v27 = vadd.f32 %v495_v21, %v172_v22  ;;  %v97_v30 = vmul.f32 12.0, %v72_v15  ;;  %s430_s22 = smov [#allocation8]   ;;  %s204_s26 = sshll.u32 %s565_s4, 4  ;;  %s205_s26 = int_to_ptr.hbm [resolvable:$true] %s204_s26 }
  0x17   :  { %267 = vrcp.f32 %v122_v17  ;;  %v195_v33 = vadd.f32 %v503_v26, %v194_v28  ;;  %v134_v34 = vand.u32 2147483648, %v122_v17  ;;  %vm128_vm0 = vweird.f32 %v122_v17  ;;  %s202_s23 = sshll.u32 %s430_s22, 4  ;;  %s203_s23 = int_to_ptr.vmem [resolvable:$true] %s202_s23 }
  0x18   :  { %v76_v23 = vadd.f32 %v75_v20, %v489_v16  ;;  %153 = vst [vmem:[#allocation11] sm:$0xff] %v152_v25  ;;  %v132_v37 = vand.u32 2147483647, %v122_v17  ;;  %v74_v38 = vmul.f32 %v489_v16, %v489_v16  ;;  %v98_v40 = vsub.f32 %v97_v30, %v489_v16 }
  0x19   :  { %175 = vst [vmem:[#allocation11 + $0x8] sm:$0xff] %v173_v27  ;;  %v135_v50 = vor.u32 1.1754944e-38, %v134_v34  ;;  %v156_v52 = vmul.f32 %v154_v42, %v154_v42  ;;  %v178_v53 = vmul.f32 %v176_v43, %v176_v43  ;;  %v107_v56 = vmul.f32 0.25, %v72_v15 }
  0x1a   :  { %269 = vrcp.f32 %v76_v23  ;;  %197 = vst [vmem:[#allocation11 + $0x10] sm:$0xff] %v195_v33  ;;  %vm82_vm2 = vweird.f32 %v76_v23  ;;  %v88_v44 = vand.u32 2147483648, %v76_v23  ;;  %v86_v48 = vand.u32 2147483647, %v76_v23 }
  0x1b   :  { %vm133_vm5 = vcmp.eq.f32.partialorder %v132_v37, 8.507059e+37  ;;  %v99_v55 = vmul.f32 %v98_v40, %v74_v38  ;;  %v108_v57 = vmul.f32 0.41666666, %v489_v16  ;;  %v103_v60 = vmul.f32 0.26666668, %v74_v38 }
  0x1c   :  { %v89_v59 = vor.u32 1.1754944e-38, %v88_v44  ;;  %vm87_vm7 = vcmp.eq.f32.partialorder %v86_v48, 8.507059e+37  ;;  %v93_v0 = vmul.f32 %v92_v46, %v489_v16  ;;  %v112_v8 = vperm.slane %v106_v41, 0 }
  0x1d   :  { %v268_v29 = vpop.eup %267  ;;  %v100_v5 = vmul.f32 0.26666668, %v99_v55  ;;  %v109_v6 = vadd.f32 %v108_v57, %v107_v56  ;;  %v96_v19 = vmul.f32 0.33333334, %v489_v16  ;;  %v165_v27 = vperm.slane %v156_v52, 0 }
  0x1e   :  { %v124_v32 = vmul.f32 %v268_v29, %v122_v17  ;;  %vm129_vm1 = vweird.f32 %v268_v29 }
  0x1f   :  { %vm518_vm4 = vmor %vm128_vm0, %vm129_vm1 }
  0x20   :  { %v270_v35 = vpop.eup %269  ;;  %v125_v36 = vsub.f32 1.0, %v124_v32  ;;  %v187_v32 = vperm.slane %v178_v53, 0 }
  0x21   :  { %v78_v39 = vmul.f32 %v270_v35, %v76_v23  ;;  %vm83_vm3 = vweird.f32 %v270_v35  ;;  %v145_v23 = vperm.slane %v478_v7, 0 }
  0x22   :  { %v126_v45 = vmul.f32 %v268_v29, %v125_v36  ;;  %vm524_vm6 = vmor %vm82_vm2, %vm83_vm3 }
  0x23   :  { %v79_v47 = vsub.f32 1.0, %v78_v39 }
  0x24   :  { %v127_v51 = vadd.f32 %v268_v29, %v126_v45 }
  0x25   :  { %v80_v54 = vmul.f32 %v270_v35, %v79_v47 }
  0x26   :  { %v131_v61 = vsel %vm518_vm4, %v268_v29, %v127_v51 }
  0x27   :  { %v81_v62 = vadd.f32 %v270_v35, %v80_v54  ;;  %v136_v63 = vsel %vm133_vm5, %v135_v50, %v131_v61 }
  0x28   :  { %v138_v1 = vmul.f32 %v136_v63, %v478_v7  ;;  %v157_v2 = vmul.f32 %v156_v52, %v136_v63  ;;  %v179_v3 = vmul.f32 %v178_v53, %v136_v63 }
  0x29   :  { %v85_v4 = vsel %vm524_vm6, %v270_v35, %v81_v62 }
  0x2a   :  { %v90_v9 = vsel %vm87_vm7, %v89_v59, %v85_v4  ;;  %v139_v11 = vsub.f32 1.0, %v138_v1  ;;  %v158_v13 = vsub.f32 1.0, %v157_v2  ;;  %v180_v15 = vsub.f32 1.0, %v179_v3 }
  0x2b   :  { %v91_v17 = vmul.f32 %v90_v9, %v90_v9  ;;  %v104_v20 = vmul.f32 %v103_v60, %v90_v9  ;;  %v94_v22 = vmul.f32 %v93_v0, %v90_v9 }
  0x2c   :  { %v147_v25 = vperm.slane %v139_v11, 0  ;;  %v167_v30 = vperm.slane %v158_v13, 0  ;;  %v189_v33 = vperm.slane %v180_v15, 0 }
  0x2d   :  { %v101_v28 = vmul.f32 %v100_v5, %v91_v17  ;;  %v110_v29 = vsub.f32 %v109_v6, %v104_v20  ;;  %v95_v31 = vadd.f32 %v94_v22, %v480_v10 }
  0x2f   :  { %v102_v34 = vsub.f32 %v96_v19, %v101_v28  ;;  %v114_v35 = vmul.f32 %v112_v8, %v110_v29  ;;  %v141_v36 = vmul.f32 %v482_v12, %v95_v31  ;;  %v160_v37 = vmul.f32 %v485_v14, %v95_v31 }
  0x30   :  { %v182_v16 = vmul.f32 %v500_v24, %v95_v31 }
  0x31   :  { %v146_v38 = vmul.f32 %v145_v23, %v102_v34  ;;  %v148_v39 = vmul.f32 %v147_v25, %v114_v35  ;;  %v166_v7 = vmul.f32 %v165_v27, %v102_v34  ;;  %v168_v40 = vmul.f32 %v167_v30, %v114_v35 }
  0x32   :  { %v188_v41 = vmul.f32 %v187_v32, %v102_v34  ;;  %v190_v42 = vmul.f32 %v189_v33, %v114_v35  ;;  %v143_v43 = vadd.f32 %v491_v18, %v141_v36  ;;  %v162_v24 = vadd.f32 %v495_v21, %v160_v37 }
  0x33   :  { %v149_v10 = vadd.f32 %v148_v39, %v146_v38  ;;  %v169_v12 = vadd.f32 %v168_v40, %v166_v7  ;;  %v184_v18 = vadd.f32 %v503_v26, %v182_v16 }
  0x34   :  { %v191_v14 = vadd.f32 %v190_v42, %v188_v41  ;;  %144 = vst [vmem:[#allocation8] sm:$0xff] %v143_v43 }
  0x35   :  { %150 = vst [vmem:[#allocation9] sm:$0xff] %v149_v10 }
  0x36   :  { %171 = vst [vmem:[#allocation9 + $0x8] sm:$0xff] %v169_v12 }
  0x37   :  { %193 = vst [vmem:[#allocation9 + $0x10] sm:$0xff] %v191_v14 }
  0x38   :  { %164 = vst [vmem:[#allocation8 + $0x8] sm:$0xff] %v162_v24  ;;  %223 = dma.vmem_to_hbm [thread:$0]  %s216_s13, 384, %s218_s16, [#allocation10], %s425_s7, %s425_s7, %s426_s8  }
  0x39   :  { %186 = vst [vmem:[#allocation8 + $0x10] sm:$0xff] %v184_v18  ;;  %236 = dma.vmem_to_hbm [thread:$0]  %s229_s18, 384, %s231_s21, [#allocation10], %s425_s7, %s425_s7, %s426_s8  }
  0x3a   :  { %210 = dma.vmem_to_hbm [thread:$0]  %s203_s23, 384, %s205_s26, [#allocation4], %s425_s7, %s425_s7, %s426_s8  }
  0x3b   :  { %419 = dma.done.wait [#allocation4], 384  }
  0x3c   :  { %420 = vsyncadd [#allocation4], 4294966912 }
  0x3d   :  { %421 = dma.done.wait [#allocation10], 768  }
  0x3e   :  { %422 = vsyncadd [#allocation10], 4294966528 }
  0x3f   :  { %249 = vsyncpa [#allocation3], 1 }
  0x40   :  { %250 = vsyncpa [#allocation6], 1 }
  0x41   :  { %251 = vsyncpa [#allocation4], 1 }
  0x42   :  { %252 = vsyncpa [#allocation10], 1 }

</bundles_post_ra>
